<compile_context>
chip_gen: v7x
topology: tpu7x:2x2x1
jax: 0.10.0
libtpu: 0.0.40
codegen_flags: <defaults>
</compile_context>

<pallas_src>
import math

import jax
import jax.numpy as jnp
import numpy as np
from jax.experimental import pallas as pl
from jax.experimental.pallas import tpu as pltpu

# ---------------- config (consistent with the VJEPAConfig used here) --------
HIDDEN = 32
NUM_HEADS = 2
HEAD_DIM = HIDDEN // NUM_HEADS           # 16
PATCH = 16
CROP = 32
FRAMES = 4
TUBELET = 2
GRID = CROP // PATCH                     # 2
DEPTH = FRAMES // TUBELET                # 2
N_TOKENS = DEPTH * GRID * GRID           # 8
BATCH = 2
SEG = 2 * (HEAD_DIM // 3 // 2)           # d_dim == h_dim == w_dim == 4
BN = BATCH * N_TOKENS                    # 16 flattened rows
QKV_W = 3 * HIDDEN                       # 96 live QKV columns
# TODO(synk): on v6e/v7x at real sizes pad QKV to a multiple of 256 lanes
# (2x256x256 MXU); 128 exactly matches v5e's MXU width.
QKV_PAD = 128                            # padded to one full vreg lane width

# RoPE-as-roll validity: pairs (2i, 2i+1) must never straddle segment / head
# boundaries (review correctness concern).
assert HIDDEN % NUM_HEADS == 0
assert HEAD_DIM % 2 == 0
assert SEG > 0 and SEG % 2 == 0 and 3 * SEG <= HEAD_DIM

# Matmul precision.  Pallas/Mosaic lowers only DEFAULT / HIGHEST for
# lax.dot_general; HIGH (bf16x3) is rejected, and DEFAULT would truncate the
# f32 operands to single-pass bf16 and blow the 1e-4 reference tolerance at
# this size.  HIGHEST is kept here (overhead-bound kernel, MXU passes are
# noise); the scaling plan is bf16 inputs + f32 accumulation with DEFAULT.
# TODO(synk): switch to bf16 inputs + preferred_element_type=f32 when
# HIDDEN / N are scaled to real VJEPA sizes.
MM_PREC = jax.lax.Precision.HIGHEST

# ----------------- packed constant-slab row layout (host <-> kernel) --------
R_WQKV = 0                       # 32 rows, lanes 0:128 : [Wq^T | Wk^T | Wv^T | 0]
R_WOUT = R_WQKV + HIDDEN         # 32 rows, lanes 0:32  : folded Wp^T @ Wo^T
R_BQKV = R_WOUT + HIDDEN         # 1 row,   lanes 0:128 : [bq | bk | bv | 0]
R_BOUT = R_BQKV + 1              # 1 row,   lanes 0:32  : folded bp @ Wo^T + bo
R_COS = 72                       # BN rows (8-sublane aligned) : RoPE cos table
R_SINA = R_COS + BN              # BN rows : sign-baked sin for roll(qkv, 127)
R_SINB = R_SINA + BN             # BN rows : sign-baked sin for roll(qkv, 1)
R_MASK = R_SINB + BN             # BN rows, lanes 0:BN : block-diag batch mask
CONST_ROWS = R_MASK + BN         # 136 rows x 128 lanes x 4B ~= 68 KiB


# ------------------------------ fused Pallas kernel --------------------------
def fused_vjepa_attention_kernel(x_ref, c_ref, o_ref):
    """QKV projection + RoPE + masked batched attention + folded output proj.

    x_ref : (B*N, H)           flattened hidden states
    c_ref : (CONST_ROWS, 128)  packed weights / biases / RoPE tables / mask
    o_ref : (B*N, H)
    """
    x = x_ref[...]

    # One MXU matmul for Q|K|V (output padded to a full 128-wide lane slab).
    qkv = jnp.dot(x, c_ref[R_WQKV:R_WQKV + HIDDEN, :],
                  preferred_element_type=jnp.float32,
                  precision=MM_PREC) + c_ref[R_BQKV:R_BQKV + 1, :]

    # Rotary embedding as an XLU lane-roll pair swizzle (no rotation matmul).
    # Even lanes pair with x[j+1], odd lanes with x[j-1]; +/- signs, parity
    # masking and identity on v / remainder / pad lanes are baked into the
    # host-built sin tables (sin == 0 there), so wrapped roll values never
    # contribute.  Kept as rolls (vs. a rotation matmul): they ride the XLU
    # slot, which is the right trade on all generations (esp. v5e, 3 XLUs).
    nbr_a = pltpu.roll(qkv, QKV_PAD - 1, axis=1)
    nbr_b = pltpu.roll(qkv, 1, axis=1)
    qkv = (qkv * c_ref[R_COS:R_COS + BN, :]
           + nbr_a * c_ref[R_SINA:R_SINA + BN, :]
           + nbr_b * c_ref[R_SINB:R_SINB + BN, :])

    # Per-head attention over ALL flattened rows at once.  Cross-batch
    # entries are masked to -1e30 before softmax -> their probabilities are
    # exactly 0, so the single (BN,BN) softmax / PV matmul equals the
    # per-batch computation while halving the number of tiny MXU pushes.
    mask = c_ref[R_MASK:R_MASK + BN, 0:BN]                       # (BN, BN)
    scale = 1.0 / math.sqrt(HEAD_DIM)

    # Accumulate the folded output projection per head (no lane-axis concat
    # of head blocks); start from the folded bias (broadcasts over rows).
    acc = c_ref[R_BOUT:R_BOUT + 1, 0:HIDDEN]                     # (1, H)
    for h in range(NUM_HEADS):                                   # unrolled
        c0 = h * HEAD_DIM
        q = qkv[:, c0:c0 + HEAD_DIM]
        k = qkv[:, HIDDEN + c0:HIDDEN + c0 + HEAD_DIM]
        v = qkv[:, 2 * HIDDEN + c0:2 * HIDDEN + c0 + HEAD_DIM]

        s = jax.lax.dot_general(
            q, k, (((1,), (1,)), ((), ())),
            preferred_element_type=jnp.float32,
            precision=MM_PREC) * scale + mask                    # (BN, BN)
        m = jnp.max(s, axis=-1, keepdims=True)
        e = jnp.exp(s - m)
        l = jnp.sum(e, axis=-1, keepdims=True)
        # One reciprocal per row, reused across the row.  approx=True (EUP
        # vrcp) is the choice at scale; exact here to hold the 1e-4 check.
        p = e * pl.reciprocal(l, approx=False)
        ctx = jnp.dot(p, v, preferred_element_type=jnp.float32,
                      precision=MM_PREC)                         # (BN, Dh)

        w_h = c_ref[R_WOUT + c0:R_WOUT + c0 + HEAD_DIM, 0:HIDDEN]
        acc = acc + jnp.dot(ctx, w_h, preferred_element_type=jnp.float32,
                            precision=MM_PREC)                   # (BN, H)

    # TODO(synk): when scaled, make this store lane-dense (H a multiple of
    # 128 or pad the folded output weight / out_shape to 128 lanes).
    o_ref[...] = acc.astype(o_ref.dtype)


# --------------------------------- wrapper -----------------------------------
def vjepa_rope_attention(x, params):
    B, N, H = x.shape
    bn = B * N
    x2 = x.reshape(bn, H)                  # contiguous collapse, no transpose

    def full2d(i):
        return (0, 0)

    out2 = pl.pallas_call(
        fused_vjepa_attention_kernel,
        out_shape=jax.ShapeDtypeStruct((bn, H), x.dtype),
        # Whole problem in one invocation; only 2 input DMA descriptors
        # (x + packed const slab) plus the output.
        # TODO(synk): when B*N / H reach real VJEPA sizes, reintroduce a
        # batch/sequence grid marked "parallel" (or CORE_PARALLEL / core_map
        # on v7x so both TensorCores are used), re-budget double-buffered
        # tiles against v7x's 64 MiB physical / 32 MiB scoped VMEM, and set
        # vmem_limit_bytes explicitly.
        grid=(1,),
        in_specs=[pl.BlockSpec((bn, H), full2d),
                  pl.BlockSpec((CONST_ROWS, QKV_PAD), full2d)],
        out_specs=pl.BlockSpec((bn, H), full2d),
        compiler_params=pltpu.CompilerParams(
            dimension_semantics=("arbitrary",)),
    )(x2, params["consts"])
    return out2.reshape(B, N, H)


# ----------------------- roll-direction self check ---------------------------
def _roll_probe_kernel(x_ref, o_ref):
    o_ref[...] = pltpu.roll(x_ref[...], 1, axis=1)


_ROLL_PROBE_CACHE = None


def _roll_shift1_is_numpy_convention():
    """Cached once-per-process probe: does pltpu.roll(x, 1) == np.roll(x, 1)?
    Only used to bind the sign-baked sin tables to the correct roll operand,
    making the kernel robust to either hardware rotate convention."""
    global _ROLL_PROBE_CACHE
    if _ROLL_PROBE_CACHE is None:
        x = np.tile(np.arange(128, dtype=np.float32)[None, :], (8, 1))
        y = pl.pallas_call(
            _roll_probe_kernel,
            out_shape=jax.ShapeDtypeStruct((8, 128), jnp.float32),
        )(jnp.asarray(x))
        _ROLL_PROBE_CACHE = bool(
            np.array_equal(np.asarray(y), np.roll(x, 1, axis=1)))
    return _ROLL_PROBE_CACHE


# -------------------- RoPE tables / parameter folding (host) -----------------
def build_position_ids():
    ids = np.arange(N_TOKENS)
    tokens_per_frame = GRID * GRID
    frame_ids = ids // tokens_per_frame
    rem = ids - tokens_per_frame * frame_ids
    height_ids = rem // GRID
    width_ids = rem - GRID * height_ids
    return frame_ids, height_ids, width_ids


def build_rope_tables():
    """Per-lane cos / sign-baked sin tables over the padded QKV width.

    Reproduces the torch rotation exactly: *tiled* (repeat) per-segment
    cos/sin, interleaved (-x[2i+1], x[2i]) pair swizzle, identity on the
    remainder head dims; v lanes and the zero pad are identity (cos=1, sin=0).
    """
    frame_ids, height_ids, width_ids = build_position_ids()

    def seg_tables(pos, seg_dim):
        half = seg_dim // 2
        omega = np.arange(half, dtype=np.float64) / (seg_dim / 2.0)
        omega = 1.0 / 10000.0 ** omega
        freq = pos.astype(np.float64)[:, None] * omega[None, :]
        return np.tile(np.cos(freq), (1, 2)), np.tile(np.sin(freq), (1, 2))

    cd, sd = seg_tables(frame_ids, SEG)
    ch, sh = seg_tables(height_ids, SEG)
    cw, sw = seg_tables(width_ids, SEG)
    rem = HEAD_DIM - 3 * SEG
    cos_head = np.concatenate([cd, ch, cw, np.ones((N_TOKENS, rem))], axis=-1)
    sin_head = np.concatenate([sd, sh, sw, np.zeros((N_TOKENS, rem))], axis=-1)

    cos_qk = np.tile(cos_head, (1, NUM_HEADS))       # (N, H), same per head
    sin_qk = np.tile(sin_head, (1, NUM_HEADS))
    id_c = np.ones((N_TOKENS, HIDDEN + QKV_PAD - QKV_W))   # v block + pad
    id_s = np.zeros_like(id_c)
    cos_row = np.concatenate([cos_qk, cos_qk, id_c], axis=1)   # (N, 128)
    sin_row = np.concatenate([sin_qk, sin_qk, id_s], axis=1)

    cos_full = np.tile(cos_row, (BATCH, 1))          # (B*N, 128)
    sin_full = np.tile(sin_row, (BATCH, 1))
    even = (np.arange(QKV_PAD) % 2 == 0)[None, :]
    sin_plus = np.where(even, -sin_full, 0.0)        # coefficient for x[j+1]
    sin_minus = np.where(even, 0.0, sin_full)        # coefficient for x[j-1]
    return cos_full, sin_plus, sin_minus


def build_params(weights):
    """Host-side (one-time) folding into a single packed f32 constant slab:
    concatenated + lane-padded QKV weight, folded (proj -> output.dense)
    weight/bias, RoPE tables, block-diagonal batch mask.  Done in float64 so
    the fold itself adds no rounding.

    NOTE: the proj/output.dense fold is only exact because both dropout
    probabilities are 0.0 (eval/default config); undo the fold for training.
    """
    wq, bq = weights["wq"], weights["bq"]
    wk, bk = weights["wk"], weights["bk"]
    wv, bv = weights["wv"], weights["bv"]
    wp, bp = weights["wp"], weights["bp"]
    wo, bo = weights["wo"], weights["bo"]

    consts = np.zeros((CONST_ROWS, QKV_PAD), np.float64)
    consts[R_WQKV:R_WQKV + HIDDEN, 0:HIDDEN] = wq.T
    consts[R_WQKV:R_WQKV + HIDDEN, HIDDEN:2 * HIDDEN] = wk.T
    consts[R_WQKV:R_WQKV + HIDDEN, 2 * HIDDEN:QKV_W] = wv.T
    consts[R_WOUT:R_WOUT + HIDDEN, 0:HIDDEN] = wp.T @ wo.T   # fold proj->dense
    consts[R_BQKV, 0:HIDDEN] = bq
    consts[R_BQKV, HIDDEN:2 * HIDDEN] = bk
    consts[R_BQKV, 2 * HIDDEN:QKV_W] = bv
    consts[R_BOUT, 0:HIDDEN] = bp @ wo.T + bo

    cos_full, sin_plus, sin_minus = build_rope_tables()
    if _roll_shift1_is_numpy_convention():
        sin_a, sin_b = sin_plus, sin_minus   # roll(x, 127) -> x[j+1]
    else:
        sin_a, sin_b = sin_minus, sin_plus
    consts[R_COS:R_COS + BN, :] = cos_full
    consts[R_SINA:R_SINA + BN, :] = sin_a
    consts[R_SINB:R_SINB + BN, :] = sin_b

    # Block-diagonal same-batch mask: 0 on in-batch blocks, -1e30 across
    # batches (exp underflows to exactly 0 after the row-max subtraction).
    row_b = np.arange(BN)[:, None] // N_TOKENS
    col_b = np.arange(BN)[None, :] // N_TOKENS
    consts[R_MASK:R_MASK + BN, 0:BN] = np.where(row_b == col_b, 0.0, -1e30)

    return dict(consts=jnp.asarray(consts.astype(np.float32)))


# ----------------------- exact NumPy reference (torch math) ------------------
def reference_forward_np(x, w):
    """Float64 NumPy replica of the torch VJEPARopeAttention forward."""
    B, N, H = x.shape

    def linear(t, W, b):
        return t @ W.T + b

    def heads(t):
        return t.reshape(B, N, NUM_HEADS, HEAD_DIM).transpose(0, 2, 1, 3)

    q = heads(linear(x, w["wq"], w["bq"]))
    k = heads(linear(x, w["wk"], w["bk"]))
    v = heads(linear(x, w["wv"], w["bv"]))

    frame_ids, height_ids, width_ids = build_position_ids()

    def rotate(t, pos):                       # rotate_queries_or_keys
        D = t.shape[-1]
        half = D // 2
        omega = np.arange(half, dtype=np.float64) / (D / 2.0)
        omega = 1.0 / 10000.0 ** omega
        freq = pos.astype(np.float64)[:, None] * omega[None, :]
        emb_sin = np.tile(np.sin(freq), (1, 2))
        emb_cos = np.tile(np.cos(freq), (1, 2))
        y = t.reshape(t.shape[:-1] + (half, 2))
        r = np.stack([-y[..., 1], y[..., 0]], axis=-1).reshape(t.shape)
        return t * emb_cos + r * emb_sin

    def rope(t):
        parts = [rotate(t[..., 0:SEG], frame_ids),
                 rotate(t[..., SEG:2 * SEG], height_ids),
                 rotate(t[..., 2 * SEG:3 * SEG], width_ids)]
        if 3 * SEG < HEAD_DIM:
            parts.append(t[..., 3 * SEG:])
        return np.concatenate(parts, axis=-1)

    q, k = rope(q), rope(k)
    scores = np.einsum("bhqd,bhkd->bhqk", q, k) / math.sqrt(HEAD_DIM)
    scores = scores - scores.max(axis=-1, keepdims=True)
    e = np.exp(scores)
    probs = e / e.sum(axis=-1, keepdims=True)
    ctx = np.einsum("bhqk,bhkd->bhqd", probs, v)
    ctx = ctx.transpose(0, 2, 1, 3).reshape(B, N, H)
    attn = linear(ctx, w["wp"], w["bp"])      # VJEPARopeSelfAttention.proj
    return linear(attn, w["wo"], w["bo"])     # VJEPASelfOutput.dense


# ----------------------------------- main -------------------------------------
if __name__ == "__main__":
    key = jax.random.PRNGKey(0)
    ks = jax.random.split(key, 11)

    def lin(kw, kb):
        w = jax.random.normal(kw, (HIDDEN, HIDDEN), jnp.float32) * 0.05
        b = jax.random.normal(kb, (HIDDEN,), jnp.float32) * 0.05
        return np.asarray(w).astype(np.float64), np.asarray(b).astype(np.float64)

    wq, bq = lin(ks[0], ks[1])
    wk, bk = lin(ks[2], ks[3])
    wv, bv = lin(ks[4], ks[5])
    wp, bp = lin(ks[6], ks[7])
    wo, bo = lin(ks[8], ks[9])
    x = jax.random.normal(ks[10], (BATCH, N_TOKENS, HIDDEN), jnp.float32)

    weights = dict(wq=wq, bq=bq, wk=wk, bk=bk, wv=wv, bv=bv,
                   wp=wp, bp=bp, wo=wo, bo=bo)
    params = build_params(weights)

    out = vjepa_rope_attention(x, params)
    out = jax.block_until_ready(out)

    ref = reference_forward_np(np.asarray(x).astype(np.float64), weights)

    assert out.shape == (BATCH, N_TOKENS, HIDDEN)
    assert np.allclose(np.asarray(out), ref, atol=1e-4, rtol=1e-4)
    print("KERNEL_OK")
</pallas_src>

<mosaic_0001>
module attributes {stable_mosaic.version = 11 : i64} {
  func.func @_roll_probe_kernel(%arg0: memref<8x128xf32, #tpu.memory_space<vmem>>, %arg1: memref<8x128xf32, #tpu.memory_space<vmem>>) attributes {dimension_semantics = [], scalar_prefetch = 0 : i64, scratch_operands = 0 : i64, tpu.core_type = #tpu.core_type<tc>} {
    %c0 = arith.constant 0 : index
    %c0_0 = arith.constant 0 : index
    %0 = vector.load %arg0[%c0, %c0_0] : memref<8x128xf32, #tpu.memory_space<vmem>>, vector<8x128xf32>
    %c1_i32 = arith.constant 1 : i32
    %1 = tpu.dynamic_rotate %0 by %c1_i32 dim 1 : vector<8x128xf32>, i32 -> vector<8x128xf32>
    %c0_1 = arith.constant 0 : index
    %c0_2 = arith.constant 0 : index
    %2 = vector.load %arg1[%c0_1, %c0_2] : memref<8x128xf32, #tpu.memory_space<vmem>>, vector<8x128xf32>
    tpu.vector_store %arg1[%c0_1, %c0_2], %1 {strides = array<i32>} : memref<8x128xf32, #tpu.memory_space<vmem>>, vector<8x128xf32>,
    return
  }
}

</mosaic_0001>

<bundles_post_ra>
// kernel: tpu_custom_call.1
= control target key start
LH: loop header
LB: loop body
LE: loop exit
PB: predicated region body
PF: predicated region fallthrough
CT: control target
= control target key end

     0   :  { %6 = vsyncpa [#allocation3], 0  ;;  %s128_s0 = inlined_call_operand.hbm [shape: f32[8,128], index: 0, kind: input, shape index: {}]   ;;  %s129_s1 = inlined_call_operand.hbm [shape: f32[8,128], index: 1, kind: output, shape index: {}]  }
   0x1   :  { %7 = vsyncpa [#allocation4], 0  ;;  %s91_s6 = smov [#allocation2]   ;;  %s43_s10 = scalar_lea.hbm %s128_s0, 128 }
   0x2   :  { %s14_s7 = sshll.u32 %s91_s6, 4  ;;  %p44_p0 = scmp.ne.s32.totalorder %s128_s0, %s43_s10  ;;  %s15_s7 = int_to_ptr.vmem [resolvable:$true] %s14_s7 }
   0x3   :  { %p47_p1 = scmp.lt.u32.totalorder %s43_s10, %s128_s0 }
   0x5   :  { %p49_p2 = pnand %p47_p1, %p44_p0 }
   0x7   :  { %52 = shalt.err (!%p49_p2)
}
   0x8   :  { %s53_s15 = scalar_lea.vmem %s15_s7, 128  ;;  %p58_p4 = scmp.lt.s32.totalorder %s15_s7, %s15_s7 }
   0x9   :  { %p54_p3 = scmp.ne.s32.totalorder %s15_s7, %s53_s15  ;;  %p59_p5 = scmp.lt.s32.totalorder %s53_s15, %s53_s15 }
   0xb   :  { %p60_p6 = por %p59_p5, %p58_p4 }
   0xd   :  { %p61_p7 = pnand %p60_p6, %p54_p3 }
   0xf   :  { %64 = shalt.err (!%p61_p7)
}
  0x10   :  { %17 = dma.hbm_to_vmem [thread:$0]  %s128_s0, 128, %s15_s7, [#allocation3]  }
  0x11   :  { %87 = dma.done.wait [#allocation3], 128  }
  0x12   :  { %88 = vsyncadd [#allocation3], 4294967168  ;;  %v21_v0 = vld [vmem:[#allocation2] sm:$0xff]  ;;  %s92_s18 = smov 1   ;;  %s93_s19 = smov [#allocation5]  }
  0x13   :  { %22 = vrot.lane.b32.xlu0 %v21_v0, %s92_s18  ;;  %s31_s20 = sshll.u32 %s93_s19, 4  ;;  %s32_s20 = int_to_ptr.vmem [resolvable:$true] %s31_s20 }
  0x14   :  { %s65_s21 = scalar_lea.vmem %s32_s20, 128  ;;  %p70_p9 = scmp.lt.s32.totalorder %s32_s20, %s32_s20 }
  0x15   :  { %p66_p8 = scmp.ne.s32.totalorder %s32_s20, %s65_s21  ;;  %p71_p10 = scmp.lt.s32.totalorder %s65_s21, %s65_s21 }
  0x17   :  { %p72_p11 = por %p71_p10, %p70_p9 }
  0x19   :  { %p73_p12 = pnand %p72_p11, %p66_p8 }
  0x85   :  { %v23_v1 = vpop.permute.xlu0 %22 }
  0x86   :  { %24 = vst [vmem:[#allocation5] sm:$0xff] %v23_v1 }
  0x87   :  { %76 = shalt.err (!%p73_p12)
}
  0x88   :  { %s77_s0 = scalar_lea.hbm %s129_s1, 128 }
  0x89   :  { %p78_p13 = scmp.ne.s32.totalorder %s129_s1, %s77_s0  ;;  %p81_p0 = scmp.lt.u32.totalorder %s77_s0, %s129_s1 }
  0x8b   :  { %p83_p1 = pnand %p81_p0, %p78_p13 }
  0x8d   :  { %86 = shalt.err (!%p83_p1)
}
  0x8e   :  { %34 = dma.vmem_to_hbm [thread:$0]  %s32_s20, 128, %s129_s1, [#allocation4]  }
  0x8f   :  { %89 = dma.done.wait [#allocation4], 128  }
  0x90   :  { %90 = vsyncadd [#allocation4], 4294967168 }
  0x91   :  { %38 = vsyncpa [#allocation3], 1 }
  0x92   :  { %39 = vsyncpa [#allocation4], 1 }

</bundles_post_ra>
